<compile_context>
chip_gen: v5e
topology: v5e:2x2
jax: 0.10.0
libtpu: 0.0.40
codegen_flags: <defaults>
</compile_context>

<pallas_src>
import functools

import jax
import jax.numpy as jnp
from jax.experimental import pallas as pl
from jax.experimental.pallas import tpu as pltpu


def _round_up(x: int, m: int) -> int:
    return ((x + m - 1) // m) * m


def _split_bf16(a_f32):
    """Split an f32 array into (hi, lo) bf16 parts with a ~= hi + lo."""
    hi = a_f32.astype(jnp.bfloat16)
    lo = (a_f32 - hi.astype(jnp.float32)).astype(jnp.bfloat16)
    return hi, lo


def rbfn_kernel(x_ref, ct_hi_ref, ct_lo_ref, cn2_ref, nbeta_ref,
                w_hi_ref, w_lo_ref, b_ref, o_ref):
    f32 = jnp.float32
    x = x_ref[...]                                        # (TILE_N, D) f32
    x_hi, x_lo = _split_bf16(x)

    # ||x - c||^2 = ||x||^2 + ||c||^2 - 2 x.c
    # Cross term on the MXU via 3 bf16 passes (f32 accumulate); norms in f32.
    xc = (jnp.dot(x_hi, ct_hi_ref[...], preferred_element_type=f32)
          + jnp.dot(x_hi, ct_lo_ref[...], preferred_element_type=f32)
          + jnp.dot(x_lo, ct_hi_ref[...], preferred_element_type=f32))
    x_norm2 = jnp.sum(x * x, axis=-1, keepdims=True)      # (TILE_N, 1) f32
    dist2 = jnp.maximum(x_norm2 + cn2_ref[...] - 2.0 * xc, 0.0)

    # RBF activations: VPU multiply + EUP exp.  Padded center columns have
    # neg_beta == 0 -> exp(0) == 1, but their weight rows are 0 -> no effect.
    rbf = jnp.exp(nbeta_ref[...] * dist2)                 # (TILE_N, C_pad) f32

    # Linear head on the MXU, same bf16 hi/lo 3-pass scheme.
    r_hi, r_lo = _split_bf16(rbf)
    out = (jnp.dot(r_hi, w_hi_ref[...], preferred_element_type=f32)
           + jnp.dot(r_hi, w_lo_ref[...], preferred_element_type=f32)
           + jnp.dot(r_lo, w_hi_ref[...], preferred_element_type=f32)
           + b_ref[...])                                  # (TILE_N, n_out)
    o_ref[...] = out.astype(o_ref.dtype)


def prepare_rbfn_params(centers, beta, w, b):
    """One-time, call-invariant parameter preprocessing.

    centers: (C, D); beta: (1, C); w: (n_out, C); b: (n_out,).
    Returns (ct_hi, ct_lo, c_norm2, neg_beta, w_hi, w_lo, b_p) laid out for the
    kernel (centers/W pre-transposed, C zero-padded to a lane multiple, bf16
    hi/lo splits precomputed).
    """
    c, d = centers.shape
    n_out = w.shape[0]
    c_pad = _round_up(c, 128)
    f32 = jnp.float32

    centers_f = centers.astype(f32)
    ct = jnp.zeros((d, c_pad), f32).at[:, :c].set(centers_f.T)
    ct_hi, ct_lo = _split_bf16(ct)

    c_norm2 = jnp.zeros((1, c_pad), f32).at[:, :c].set(
        jnp.sum(centers_f * centers_f, axis=-1)[None, :])
    neg_beta = jnp.zeros((1, c_pad), f32).at[:, :c].set(
        -beta.astype(f32).reshape(1, c))

    wt = jnp.zeros((c_pad, n_out), f32).at[:c, :].set(w.astype(f32).T)
    w_hi, w_lo = _split_bf16(wt)

    b_p = b.astype(f32).reshape(1, n_out)
    return ct_hi, ct_lo, c_norm2, neg_beta, w_hi, w_lo, b_p


@functools.partial(jax.jit, static_argnames=("tile_n",))
def rbfn_forward(x, ct_hi, ct_lo, c_norm2, neg_beta, w_hi, w_lo, b_p,
                 *, tile_n=1024):
    """x: (N, D) plus prepared params from prepare_rbfn_params -> (N, n_out)."""
    n, d = x.shape
    c_pad = ct_hi.shape[1]
    n_out = w_hi.shape[1]
    x = x.astype(jnp.float32)

    tile_n = max(8, min(tile_n, _round_up(n, 8)))
    grid = (pl.cdiv(n, tile_n),)

    return pl.pallas_call(
        rbfn_kernel,
        out_shape=jax.ShapeDtypeStruct((n, n_out), jnp.float32),
        grid=grid,
        in_specs=[
            pl.BlockSpec((tile_n, d), lambda i: (i, 0)),     # streamed x tiles
            pl.BlockSpec((d, c_pad), lambda i: (0, 0)),      # resident centers^T (hi)
            pl.BlockSpec((d, c_pad), lambda i: (0, 0)),      # resident centers^T (lo)
            pl.BlockSpec((1, c_pad), lambda i: (0, 0)),      # resident ||c||^2
            pl.BlockSpec((1, c_pad), lambda i: (0, 0)),      # resident -beta
            pl.BlockSpec((c_pad, n_out), lambda i: (0, 0)),  # resident W^T (hi)
            pl.BlockSpec((c_pad, n_out), lambda i: (0, 0)),  # resident W^T (lo)
            pl.BlockSpec((1, n_out), lambda i: (0, 0)),      # resident bias
        ],
        out_specs=pl.BlockSpec((tile_n, n_out), lambda i: (i, 0)),
        compiler_params=pltpu.CompilerParams(
            dimension_semantics=("parallel",)),
    )(x, ct_hi, ct_lo, c_norm2, neg_beta, w_hi, w_lo, b_p)


def rbfn_reference(x, centers, beta, w, b):
    diff = x[:, None, :] - centers[None, :, :]
    dist2 = jnp.sum(diff * diff, axis=2)
    rbf = jnp.exp(-beta * dist2)
    return rbf @ w.T + b[None, :]


if __name__ == "__main__":
    # Small shapes consistent with the module: in_feature=16, center_num=32, n_out=1.
    batch, in_feature, center_num, n_out = 8, 16, 32, 1

    key = jax.random.PRNGKey(0)
    k_x, k_c, k_w = jax.random.split(key, 3)

    # Parameter init mirroring RBFN.__init__ / initialize_weights:
    #   centers ~ randn, beta = ones, linear.weight ~ N(0, 0.02), linear.bias = 0.
    # x / centers are scaled so the RBF activations are non-degenerate
    # (unscaled 16-d gaussians give dist2 ~ 32 and exp(-32) ~ 0 everywhere).
    x = 0.25 * jax.random.normal(k_x, (batch, in_feature), dtype=jnp.float32)
    centers = 0.25 * jax.random.normal(k_c, (center_num, in_feature),
                                       dtype=jnp.float32)
    beta = jnp.ones((1, center_num), dtype=jnp.float32)
    w = 0.02 * jax.random.normal(k_w, (n_out, center_num), dtype=jnp.float32)
    b = jnp.zeros((n_out,), dtype=jnp.float32)

    params = prepare_rbfn_params(centers, beta, w, b)   # one-time, call-invariant
    out = rbfn_forward(x, *params)
    out = jax.block_until_ready(out)

    ref = rbfn_reference(x, centers, beta, w, b)
    assert out.shape == (batch, n_out), out.shape
    err = float(jnp.max(jnp.abs(out - ref)))
    assert jnp.allclose(out, ref, atol=2e-5, rtol=1e-4), f"mismatch vs reference: {err}"

    print("KERNEL_OK")
</pallas_src>

<mosaic_0001>
module attributes {stable_mosaic.version = 11 : i64} {
  func.func @rbfn_kernel(%arg0: i32, %arg1: memref<8x16xf32, #tpu.memory_space<vmem>>, %arg2: memref<16x128xbf16, #tpu.memory_space<vmem>>, %arg3: memref<16x128xbf16, #tpu.memory_space<vmem>>, %arg4: memref<1x128xf32, #tpu.memory_space<vmem>>, %arg5: memref<1x128xf32, #tpu.memory_space<vmem>>, %arg6: memref<128x1xbf16, #tpu.memory_space<vmem>>, %arg7: memref<128x1xbf16, #tpu.memory_space<vmem>>, %arg8: memref<1x1xf32, #tpu.memory_space<vmem>>, %arg9: memref<8x1xf32, #tpu.memory_space<vmem>>) attributes {dimension_semantics = [#tpu.dimension_semantics<parallel>], iteration_bounds = array<i64: 1>, scalar_prefetch = 0 : i64, scratch_operands = 0 : i64, tpu.core_type = #tpu.core_type<tc>, window_params = [{transform_indices = @transform_0, window_bounds = array<i64: 8, 16>}, {pipeline_mode = #tpu.pipeline_mode<synchronous>, transform_indices = @transform_1, window_bounds = array<i64: 16, 128>}, {pipeline_mode = #tpu.pipeline_mode<synchronous>, transform_indices = @transform_2, window_bounds = array<i64: 16, 128>}, {pipeline_mode = #tpu.pipeline_mode<synchronous>, transform_indices = @transform_3, window_bounds = array<i64: 1, 128>}, {pipeline_mode = #tpu.pipeline_mode<synchronous>, transform_indices = @transform_4, window_bounds = array<i64: 1, 128>}, {pipeline_mode = #tpu.pipeline_mode<synchronous>, transform_indices = @transform_5, window_bounds = array<i64: 128, 1>}, {pipeline_mode = #tpu.pipeline_mode<synchronous>, transform_indices = @transform_6, window_bounds = array<i64: 128, 1>}, {pipeline_mode = #tpu.pipeline_mode<synchronous>, transform_indices = @transform_7, window_bounds = array<i64: 1, 1>}, {transform_indices = @transform_8, window_bounds = array<i64: 8, 1>}]} {
    %c0 = arith.constant 0 : index
    %c0_0 = arith.constant 0 : index
    %0 = vector.load %arg1[%c0, %c0_0] : memref<8x16xf32, #tpu.memory_space<vmem>>, vector<8x16xf32>
    %1 = arith.truncf %0 : vector<8x16xf32> to vector<8x16xbf16>
    %2 = arith.extf %1 : vector<8x16xbf16> to vector<8x16xf32>
    %3 = arith.subf %0, %2 : vector<8x16xf32>
    %4 = arith.truncf %3 : vector<8x16xf32> to vector<8x16xbf16>
    %c0_1 = arith.constant 0 : index
    %c0_2 = arith.constant 0 : index
    %5 = vector.load %arg2[%c0_1, %c0_2] : memref<16x128xbf16, #tpu.memory_space<vmem>>, vector<16x128xbf16>
    %cst = arith.constant dense<0.000000e+00> : vector<8x128xf32>
    %6 = tpu.matmul %1, %5, %cst {dimension_numbers = #tpu.dot_dimension_numbers<[1], [0], [0], [1], [0, 0, 1, 1], [], []>} : vector<8x16xbf16>, vector<16x128xbf16>, vector<8x128xf32> -> vector<8x128xf32>
    %c0_3 = arith.constant 0 : index
    %c0_4 = arith.constant 0 : index
    %7 = vector.load %arg3[%c0_3, %c0_4] : memref<16x128xbf16, #tpu.memory_space<vmem>>, vector<16x128xbf16>
    %cst_5 = arith.constant dense<0.000000e+00> : vector<8x128xf32>
    %8 = tpu.matmul %1, %7, %cst_5 {dimension_numbers = #tpu.dot_dimension_numbers<[1], [0], [0], [1], [0, 0, 1, 1], [], []>} : vector<8x16xbf16>, vector<16x128xbf16>, vector<8x128xf32> -> vector<8x128xf32>
    %9 = arith.addf %6, %8 : vector<8x128xf32>
    %c0_6 = arith.constant 0 : index
    %c0_7 = arith.constant 0 : index
    %10 = vector.load %arg2[%c0_6, %c0_7] : memref<16x128xbf16, #tpu.memory_space<vmem>>, vector<16x128xbf16>
    %cst_8 = arith.constant dense<0.000000e+00> : vector<8x128xf32>
    %11 = tpu.matmul %4, %10, %cst_8 {dimension_numbers = #tpu.dot_dimension_numbers<[1], [0], [0], [1], [0, 0, 1, 1], [], []>} : vector<8x16xbf16>, vector<16x128xbf16>, vector<8x128xf32> -> vector<8x128xf32>
    %12 = arith.addf %9, %11 : vector<8x128xf32>
    %13 = arith.mulf %0, %0 : vector<8x16xf32>
    %cst_9 = arith.constant dense<0.000000e+00> : vector<8xf32>
    %14 = vector.multi_reduction <add>, %13, %cst_9 [1] : vector<8x16xf32> to vector<8xf32>
    %15 = vector.shape_cast %14 : vector<8xf32> to vector<8x1xf32>
    %c0_10 = arith.constant 0 : index
    %c0_11 = arith.constant 0 : index
    %16 = vector.load %arg4[%c0_10, %c0_11] : memref<1x128xf32, #tpu.memory_space<vmem>>, vector<1x128xf32>
    %17 = vector.broadcast %15 : vector<8x1xf32> to vector<8x128xf32>
    %18 = vector.broadcast %16 : vector<1x128xf32> to vector<8x128xf32>
    %19 = arith.addf %17, %18 : vector<8x128xf32>
    %cst_12 = arith.constant 2.000000e+00 : f32
    %20 = vector.broadcast %cst_12 : f32 to vector<8x128xf32>
    %21 = arith.mulf %20, %12 : vector<8x128xf32>
    %22 = arith.subf %19, %21 : vector<8x128xf32>
    %cst_13 = arith.constant 0.000000e+00 : f32
    %23 = vector.broadcast %cst_13 : f32 to vector<8x128xf32>
    %24 = arith.maximumf %22, %23 : vector<8x128xf32>
    %c0_14 = arith.constant 0 : index
    %c0_15 = arith.constant 0 : index
    %25 = vector.load %arg5[%c0_14, %c0_15] : memref<1x128xf32, #tpu.memory_space<vmem>>, vector<1x128xf32>
    %26 = vector.broadcast %25 : vector<1x128xf32> to vector<8x128xf32>
    %27 = arith.mulf %26, %24 : vector<8x128xf32>
    %28 = math.exp %27 : vector<8x128xf32>
    %29 = arith.truncf %28 : vector<8x128xf32> to vector<8x128xbf16>
    %30 = arith.extf %29 : vector<8x128xbf16> to vector<8x128xf32>
    %31 = arith.subf %28, %30 : vector<8x128xf32>
    %32 = arith.truncf %31 : vector<8x128xf32> to vector<8x128xbf16>
    %c0_16 = arith.constant 0 : index
    %c0_17 = arith.constant 0 : index
    %33 = vector.load %arg6[%c0_16, %c0_17] : memref<128x1xbf16, #tpu.memory_space<vmem>>, vector<128x1xbf16>
    %cst_18 = arith.constant dense<0.000000e+00> : vector<8x1xf32>
    %34 = tpu.matmul %29, %33, %cst_18 {dimension_numbers = #tpu.dot_dimension_numbers<[1], [0], [0], [1], [0, 0, 1, 1], [], []>} : vector<8x128xbf16>, vector<128x1xbf16>, vector<8x1xf32> -> vector<8x1xf32>
    %c0_19 = arith.constant 0 : index
    %c0_20 = arith.constant 0 : index
    %35 = vector.load %arg7[%c0_19, %c0_20] : memref<128x1xbf16, #tpu.memory_space<vmem>>, vector<128x1xbf16>
    %cst_21 = arith.constant dense<0.000000e+00> : vector<8x1xf32>
    %36 = tpu.matmul %29, %35, %cst_21 {dimension_numbers = #tpu.dot_dimension_numbers<[1], [0], [0], [1], [0, 0, 1, 1], [], []>} : vector<8x128xbf16>, vector<128x1xbf16>, vector<8x1xf32> -> vector<8x1xf32>
    %37 = arith.addf %34, %36 : vector<8x1xf32>
    %c0_22 = arith.constant 0 : index
    %c0_23 = arith.constant 0 : index
    %38 = vector.load %arg6[%c0_22, %c0_23] : memref<128x1xbf16, #tpu.memory_space<vmem>>, vector<128x1xbf16>
    %cst_24 = arith.constant dense<0.000000e+00> : vector<8x1xf32>
    %39 = tpu.matmul %32, %38, %cst_24 {dimension_numbers = #tpu.dot_dimension_numbers<[1], [0], [0], [1], [0, 0, 1, 1], [], []>} : vector<8x128xbf16>, vector<128x1xbf16>, vector<8x1xf32> -> vector<8x1xf32>
    %40 = arith.addf %37, %39 : vector<8x1xf32>
    %c0_25 = arith.constant 0 : index
    %c0_26 = arith.constant 0 : index
    %41 = vector.load %arg8[%c0_25, %c0_26] : memref<1x1xf32, #tpu.memory_space<vmem>>, vector<1x1xf32>
    %42 = vector.broadcast %41 : vector<1x1xf32> to vector<8x1xf32>
    %43 = arith.addf %40, %42 : vector<8x1xf32>
    %c0_27 = arith.constant 0 : index
    %c0_28 = arith.constant 0 : index
    %44 = vector.load %arg9[%c0_27, %c0_28] : memref<8x1xf32, #tpu.memory_space<vmem>>, vector<8x1xf32>
    tpu.vector_store %arg9[%c0_27, %c0_28], %43 {strides = array<i32>} : memref<8x1xf32, #tpu.memory_space<vmem>>, vector<8x1xf32>,
    return
  }
  func.func @transform_0(%arg0: i32) -> (i32, i32) {
    %c0_i32 = arith.constant 0 : i32
    %c0_i32_0 = arith.constant 0 : i32
    return %arg0, %c0_i32 : i32, i32
  }
  func.func @transform_1(%arg0: i32) -> (i32, i32) {
    %c0_i32 = arith.constant 0 : i32
    %c0_i32_0 = arith.constant 0 : i32
    %c0_i32_1 = arith.constant 0 : i32
    return %c0_i32, %c0_i32_0 : i32, i32
  }
  func.func @transform_2(%arg0: i32) -> (i32, i32) {
    %c0_i32 = arith.constant 0 : i32
    %c0_i32_0 = arith.constant 0 : i32
    %c0_i32_1 = arith.constant 0 : i32
    return %c0_i32, %c0_i32_0 : i32, i32
  }
  func.func @transform_3(%arg0: i32) -> (i32, i32) {
    %c0_i32 = arith.constant 0 : i32
    %c0_i32_0 = arith.constant 0 : i32
    %c0_i32_1 = arith.constant 0 : i32
    return %c0_i32, %c0_i32_0 : i32, i32
  }
  func.func @transform_4(%arg0: i32) -> (i32, i32) {
    %c0_i32 = arith.constant 0 : i32
    %c0_i32_0 = arith.constant 0 : i32
    %c0_i32_1 = arith.constant 0 : i32
    return %c0_i32, %c0_i32_0 : i32, i32
  }
  func.func @transform_5(%arg0: i32) -> (i32, i32) {
    %c0_i32 = arith.constant 0 : i32
    %c0_i32_0 = arith.constant 0 : i32
    %c0_i32_1 = arith.constant 0 : i32
    return %c0_i32, %c0_i32_0 : i32, i32
  }
  func.func @transform_6(%arg0: i32) -> (i32, i32) {
    %c0_i32 = arith.constant 0 : i32
    %c0_i32_0 = arith.constant 0 : i32
    %c0_i32_1 = arith.constant 0 : i32
    return %c0_i32, %c0_i32_0 : i32, i32
  }
  func.func @transform_7(%arg0: i32) -> (i32, i32) {
    %c0_i32 = arith.constant 0 : i32
    %c0_i32_0 = arith.constant 0 : i32
    %c0_i32_1 = arith.constant 0 : i32
    return %c0_i32, %c0_i32_0 : i32, i32
  }
  func.func @transform_8(%arg0: i32) -> (i32, i32) {
    %c0_i32 = arith.constant 0 : i32
    %c0_i32_0 = arith.constant 0 : i32
    return %arg0, %c0_i32 : i32, i32
  }
}

</mosaic_0001>

<bundles_post_ra>
// kernel: rbfn_forward.1
= control target key start
LH: loop header
LB: loop body
LE: loop exit
PB: predicated region body
PF: predicated region fallthrough
CT: control target
= control target key end

     0   :  { %vm47_vm0 = vcmask 130048   ;;  %vm296_vm1 = vcmask 7168   ;;  %s514_s2 = inlined_call_operand.vmem [shape: bf16[16,128], index: 2, kind: input, shape index: {}]   ;;  %s515_s0 = inlined_call_operand.vmem [shape: f32[8,16], index: 0, kind: input, shape index: {}]   ;;  %s516_s1 = inlined_call_operand.vmem [shape: bf16[16,128], index: 1, kind: input, shape index: {}]   ;;  %s517_s3 = inlined_call_operand.vmem [shape: f32[1,128], index: 3, kind: input, shape index: {}]   ;;  %s518_s4 = inlined_call_operand.vmem [shape: f32[1,128], index: 4, kind: input, shape index: {}]   ;;  %s519_s6 = inlined_call_operand.vmem [shape: bf16[128,1], index: 6, kind: input, shape index: {}]   ;;  %s520_s5 = inlined_call_operand.vmem [shape: bf16[128,1], index: 5, kind: input, shape index: {}]   ;;  %s521_s7 = inlined_call_operand.<no memory space> [shape: f32[1,1], index: 7, kind: input, shape index: {}]   ;;  %s522_s8 = inlined_call_operand.vmem [shape: f32[8,1], index: 8, kind: output, shape index: {}]  }
   0x1   :  { %v378_v0 = vld [vmem:[%s514_s2] sm:$0xff]  ;;  %v394_v9 = vld [vmem:[%s519_s6 + $0x38] sm:$0xff]  ;;  %v393_v11 = vld [vmem:[%s519_s6 + $0x30] sm:$0xff]  ;;  %v13_v47 = vstv %s521_s7 }
   0x2   :  { %v32_v1 = vld [vmem:[%s515_s0] sm:$0xff]  ;;  %58 = vmatpush.bf16.msra.mxu2 %v378_v0  ;;  %v386_v10 = vld [vmem:[%s520_s5 + $0x38] sm:$0xff]  ;;  %203 = vmatpush.bf16.msra.mxu3 %v394_v9  ;;  %v385_v12 = vld [vmem:[%s520_s5 + $0x30] sm:$0xff]  ;;  %14 = vst [vmem:[#allocation2] sm:$0x1] %v13_v47 }
   0x3   :  { %v377_v2 = vld [vmem:[%s516_s1] sm:$0xff]  ;;  %v33_v3 = vpack.c.bf16 %v32_v1, %v32_v1  ;;  %v100_v4 = vmul.f32 %v32_v1, %v32_v1  ;;  %264 = vmatpush.bf16.msra.mxu0 %v386_v10  ;;  %v392_v13 = vld [vmem:[%s519_s6 + $0x28] sm:$0xff]  ;;  %v390_v17 = vld [vmem:[%s519_s6 + $0x18] sm:$0xff] }
   0x4   :  { %77 = vmatpush.bf16.msra.mxu1 %v377_v2  ;;  %v384_v14 = vld [vmem:[%s520_s5 + $0x28] sm:$0xff]  ;;  %v391_v15 = vld [vmem:[%s519_s6 + $0x20] sm:$0xff]  ;;  %v382_v18 = vld [vmem:[%s520_s5 + $0x18] sm:$0xff] }
   0x5   :  { %v101_v5 = vsel %vm47_vm0, %v100_v4, 0.0  ;;  %306 = vmatmul.msk.bf16.vlgmr.msra.gmra.mxu2 %vm47_vm0, %v33_v3  ;;  %v34_v6 = vunpack.c.l.bf16 %v33_v3  ;;  %v383_v16 = vld [vmem:[%s520_s5 + $0x20] sm:$0xff]  ;;  %v389_v19 = vld [vmem:[%s519_s6 + $0x10] sm:$0xff]  ;;  %v388_v22 = vld [vmem:[%s519_s6 + $0x8] sm:$0xff] }
   0x6   :  { %93 = vmatpush.bf16.msrb.mxu2 %v377_v2  ;;  %102 = vadd.xlane.f32.xlu0 %v101_v5  ;;  %v381_v20 = vld [vmem:[%s520_s5 + $0x10] sm:$0xff]  ;;  %v380_v23 = vld [vmem:[%s520_s5 + $0x8] sm:$0xff]  ;;  %v387_v24 = vld [vmem:[%s519_s6] sm:$0xff] }
   0x7   :  { %311 = vmatmul.msk.bf16.vlgmr.msra.gmra.mxu1 %vm47_vm0, %v33_v3  ;;  %v35_v7 = vsub.f32 %v32_v1, %v34_v6  ;;  %204 = vmatpush.bf16.msra.mxu3 %v393_v11  ;;  %v379_v25 = vld [vmem:[%s520_s5] sm:$0xff] }
   0x8   :  { %277 = vmatpush.bf16.msrb.mxu1 %v386_v10  ;;  %265 = vmatpush.bf16.msra.mxu0 %v385_v12  ;;  %v395_v29 = vld [vmem:[%s517_s3] ss:$0 sm:$0xff] }
   0x9   :  { %v36_v8 = vpack.c.bf16 %v35_v7, %v35_v7  ;;  %v396_v37 = vld [vmem:[%s518_s4] ss:$0 sm:$0xff] }
   0xa   :  { %v397_v52 = vld [vmem:[#allocation2] ss:$0 sm:$0xff] }
   0xb   :  { %205 = vmatpush.bf16.msra.mxu3 %v392_v13 }
   0xc   :  { %278 = vmatpush.bf16.msrb.mxu1 %v385_v12  ;;  %266 = vmatpush.bf16.msra.mxu0 %v384_v14 }
   0xf   :  { %206 = vmatpush.bf16.msra.mxu3 %v391_v15 }
  0x10   :  { %279 = vmatpush.bf16.msrb.mxu1 %v384_v14  ;;  %267 = vmatpush.bf16.msra.mxu0 %v383_v16 }
  0x13   :  { %207 = vmatpush.bf16.msra.mxu3 %v390_v17 }
  0x14   :  { %280 = vmatpush.bf16.msrb.mxu1 %v383_v16  ;;  %268 = vmatpush.bf16.msra.mxu0 %v382_v18 }
  0x15   :  { %312 = vmatmul.msk.bf16.vlgmr.msrb.gmra.mxu2 %vm47_vm0, %v36_v8 }
  0x17   :  { %208 = vmatpush.bf16.msra.mxu3 %v389_v19 }
  0x18   :  { %281 = vmatpush.bf16.msrb.mxu1 %v382_v18  ;;  %269 = vmatpush.bf16.msra.mxu0 %v381_v20 }
  0x1b   :  { %209 = vmatpush.bf16.msra.mxu3 %v388_v22 }
  0x1c   :  { %282 = vmatpush.bf16.msrb.mxu1 %v381_v20  ;;  %270 = vmatpush.bf16.msra.mxu0 %v380_v23 }
  0x1f   :  { %210 = vmatpush.bf16.msra.mxu3 %v387_v24 }
  0x20   :  { %283 = vmatpush.bf16.msrb.mxu1 %v380_v23  ;;  %271 = vmatpush.bf16.msra.mxu0 %v379_v25 }
  0x24   :  { %284 = vmatpush.bf16.msrb.mxu1 %v379_v25 }
  0x79   :  { %v103_v30 = vpop.xlane.xlu0 %102 }
  0x7a   :  { %v108_v34 = vadd.f32 %v395_v29, %v103_v30 }
  0x84   :  { %v79_v21 = vpop.f32.mrf.mxu1 }
  0x88   :  { %v60_v26 = vpop.f32.mrf.mxu2 }
  0x89   :  { %v80_v31 = vadd.f32 %v79_v21, %v60_v26 }
  0x8c   :  { %v81_v27 = vpop.f32.mrf.mxu1 }
  0x90   :  { %v62_v28 = vpop.f32.mrf.mxu2 }
  0x98   :  { %v95_v32 = vpop.f32.mrf.mxu2 }
  0x99   :  { %v99_v33 = vadd.f32 %v95_v32, %v80_v31 }
  0x9b   :  { %v109_v35 = vmul.f32 2.0, %v99_v33 }
  0x9d   :  { %v110_v36 = vsub.f32 %v108_v34, %v109_v35 }
  0x9f   :  { %v111_v38 = vmax.f32 %v110_v36, 0.0 }
  0xa0   :  { %v97_v39 = vpop.f32.mrf.mxu2 }
  0xa1   :  { %v116_v40 = vmul.f32 %v396_v37, %v111_v38 }
  0xa3   :  { %v117_v41 = vmul.f32 1.442695, %v116_v40 }
  0xa5   :  { %398 = vpow2.f32 %v117_v41 }
  0xab   :  { %v399_v42 = vpop.eup %398 }
  0xac   :  { %v119_v43 = vpack.c.bf16 %v399_v42, %v399_v42 }
  0xae   :  { %211 = vmatmul.bf16.vlgmr.msra.gmra.mxu3 %v119_v43  ;;  %272 = vmatmul.bf16.vlgmr.msra.gmra.mxu0 %v119_v43  ;;  %v120_v44 = vunpack.c.l.bf16 %v119_v43 }
  0xb0   :  { %v121_v45 = vsub.f32 %v399_v42, %v120_v44 }
  0xb2   :  { %v122_v46 = vpack.c.bf16 %v121_v45, %v121_v45 }
  0xb4   :  { %285 = vmatmul.bf16.vlgmr.msrb.gmra.mxu1 %v122_v46 }
 0x12b   :  { %v273_v48 = vpop.f32.mrf.mxu0 }
 0x131   :  { %v212_v49 = vpop.f32.mrf.mxu3  ;;  %v286_v50 = vpop.f32.mrf.mxu1 }
 0x132   :  { %v274_v51 = vadd.f32 %v273_v48, %v212_v49 }
 0x133   :  { %v275_v53 = vpop.f32.mrf.mxu0 }
 0x134   :  { %v290_v54 = vadd.f32 %v286_v50, %v274_v51 }
 0x136   :  { %v295_v55 = vadd.f32 %v397_v52, %v290_v54 }
 0x138   :  { %297 = vst.msk [vmem:[%s522_s8] sm:$0xff] %vm296_vm1, %v295_v55 }
 0x139   :  { %v214_v56 = vpop.f32.mrf.mxu3  ;;  %v288_v57 = vpop.f32.mrf.mxu1 }

</bundles_post_ra>
